<compile_context>
chip_gen: v7x
topology: tpu7x:2x2x1
jax: 0.10.0
libtpu: 0.0.40
codegen_flags: <defaults>
</compile_context>

<pallas_src>
import math

import jax
import jax.numpy as jnp
from jax.experimental import pallas as pl
from jax.experimental.pallas import tpu as pltpu

_MIB = 1024 * 1024


def _round_up(a, b):
    return (a + b - 1) // b * b


# ---------------------------------------------------------------------------
# One-time capability probes.
# ---------------------------------------------------------------------------
_SINGLE_BUFFER_OK = None


def _single_buffer_supported():
    """Probe whether pipeline_mode=pl.Buffered(1) works on this build.

    Constant-index (resident) operands are otherwise silently double-buffered,
    doubling their VMEM footprint.  The probe compiles a tiny kernel once and
    caches the result; on any failure we fall back to default buffering (the
    previously-validated configuration)."""
    global _SINGLE_BUFFER_OK
    if _SINGLE_BUFFER_OK is not None:
        return _SINGLE_BUFFER_OK
    try:
        def _probe(a_ref, o_ref):
            o_ref[...] = a_ref[...] * 2.0

        x = jnp.ones((8, 128), jnp.float32)
        r = pl.pallas_call(
            _probe,
            out_shape=jax.ShapeDtypeStruct((16, 128), jnp.float32),
            grid=(2,),
            in_specs=[pl.BlockSpec((8, 128), lambda i: (0, 0),
                                   pipeline_mode=pl.Buffered(1))],
            out_specs=pl.BlockSpec((8, 128), lambda i: (i, 0)),
        )(x)
        r = jax.block_until_ready(r)
        _SINGLE_BUFFER_OK = bool(jnp.allclose(r, 2.0))
    except Exception:
        _SINGLE_BUFFER_OK = False
    return _SINGLE_BUFFER_OK


def _vmem_budget_bytes():
    """Per-TensorCore VMEM capacity minus ~8 MiB headroom.

    Falls back to the smallest real capacity (v7x: 64 MiB/TC) if the query is
    unavailable, so the clamp is always valid on every generation."""
    try:
        cap = int(pltpu.get_tpu_info().vmem_capacity_bytes)
    except Exception:
        cap = 64 * _MIB
    return max(cap - 8 * _MIB, 16 * _MIB)


# ---------------------------------------------------------------------------
# Kernel
# ---------------------------------------------------------------------------
def _mlp_kernel(x_ref, w1_ref, b1_ref, w2_ref, b2_ref, o_ref):
    # x_ref  : (TM, C) compute dtype (f32 or bf16)  -- pipelined row tile
    # w1_ref : (C, H)  compute dtype                -- resident across grid
    # b1_ref : (1, H)  f32                          -- resident
    # w2_ref : (H, H)  compute dtype                -- resident
    # b2_ref : (1, H)  f32                          -- resident
    # o_ref  : (TM, H) out dtype
    # fc1 on the MXU; always accumulate in f32.
    h = jnp.dot(x_ref[...], w1_ref[...], preferred_element_type=jnp.float32)
    h = h + b1_ref[...]

    # GELU(approximate='tanh') in f32 (EUP tanh, VPU mul/add):
    #   0.5 * x * (1 + tanh(sqrt(2/pi) * (x + 0.044715 * x^3)))
    c = 0.7978845608028654  # sqrt(2/pi)
    h = 0.5 * h * (1.0 + jnp.tanh(c * (h + 0.044715 * (h * h * h))))

    # drop1 / norm(Identity) / drop2 are identities (drop=0, norm_layer=None).

    # fc2: cast back to the compute dtype so bf16 weights hit the fast MXU
    # path; accumulation stays f32.
    o = jnp.dot(h.astype(w2_ref.dtype), w2_ref[...],
                preferred_element_type=jnp.float32)
    o_ref[...] = (o + b2_ref[...]).astype(o_ref.dtype)


def _choose_tm(m_pad, c, h, in_itemsize, out_itemsize, weight_bytes, budget):
    """Largest row tile (multiple of 8, <=512, dividing m_pad) whose
    double-buffered x/out tiles fit alongside the resident weights."""
    per_row = 2 * c * in_itemsize + 2 * h * out_itemsize
    avail = max(budget - weight_bytes, 8 * per_row)
    cap = max(8, int(avail // per_row) // 8 * 8)
    target = min(512, cap, m_pad)
    target = max(8, target // 8 * 8)
    tm = target
    while tm > 8 and m_pad % tm != 0:
        tm -= 8
    return tm


def _mlp_pallas(x, w1, b1, w2, b2, *, compute_dtype=jnp.float32,
                out_dtype=jnp.float32):
    """(M, C) -> fc1 -> tanh-GELU -> fc2, tiled over M with resident weights."""
    M, C = x.shape
    H = w1.shape[1]

    in_itemsize = jnp.dtype(compute_dtype).itemsize
    out_itemsize = jnp.dtype(out_dtype).itemsize

    single_buffer = _single_buffer_supported()
    weight_bufs = 1 if single_buffer else 2
    weight_bytes = weight_bufs * ((C * H + H * H) * in_itemsize + 2 * H * 4)
    budget = _vmem_budget_bytes()

    # Pad rows only to the sublane multiple (8); pick TM dividing M_pad so no
    # full-array pad copy and no wasted MXU rows beyond <=7.
    M_pad = _round_up(M, 8)
    if M_pad != M:
        x = jnp.pad(x, ((0, M_pad - M), (0, 0)))
    TM = _choose_tm(M_pad, C, H, in_itemsize, out_itemsize, weight_bytes, budget)

    # Casts are no-ops when the caller pre-cast via prepare_params().
    xc = x if x.dtype == compute_dtype else x.astype(compute_dtype)
    w1c = w1 if w1.dtype == compute_dtype else w1.astype(compute_dtype)
    w2c = w2 if w2.dtype == compute_dtype else w2.astype(compute_dtype)
    b1r = b1.reshape(1, H).astype(jnp.float32)
    b2r = b2.reshape(1, H).astype(jnp.float32)

    grid = (M_pad // TM,)

    # Advisory cost estimate for XLA's scheduler.
    flops = 2 * M_pad * C * H + 2 * M_pad * H * H
    bytes_accessed = (M_pad * C * in_itemsize        # x
                      + (C * H + H * H) * in_itemsize  # weights
                      + 2 * H * 4                    # biases
                      + M_pad * H * out_itemsize)    # out
    cost = pl.CostEstimate(flops=int(flops), transcendentals=int(M_pad * H),
                           bytes_accessed=int(bytes_accessed))

    # Honest VMEM need: weights * actual buffer count + double-buffered tiles.
    vmem_need = (weight_bytes
                 + 2 * TM * C * in_itemsize
                 + 2 * TM * H * out_itemsize)
    # Always pass an explicit limit (v5e scoped default is only 16 MiB), and
    # clamp to the real capacity minus headroom (v7x has only 64 MiB/TC).
    vmem_limit = int(min(max(vmem_need * 5 // 4, 16 * _MIB), budget))

    if single_buffer:
        def resident(shape):
            return pl.BlockSpec(shape, lambda i: (0, 0),
                                pipeline_mode=pl.Buffered(1))
    else:
        def resident(shape):
            return pl.BlockSpec(shape, lambda i: (0, 0))

    out = pl.pallas_call(
        _mlp_kernel,
        out_shape=jax.ShapeDtypeStruct((M_pad, H), out_dtype),
        grid=grid,
        in_specs=[
            pl.BlockSpec((TM, C), lambda i: (i, 0)),  # x row tile (pipelined)
            resident((C, H)),                          # fc1 weight (resident)
            resident((1, H)),                          # fc1 bias   (resident)
            resident((H, H)),                          # fc2 weight (resident)
            resident((1, H)),                          # fc2 bias   (resident)
        ],
        out_specs=pl.BlockSpec((TM, H), lambda i: (i, 0)),
        compiler_params=pltpu.CompilerParams(
            # Row tiles are independent.
            # TODO(synk): on v7x, verify "parallel" shards the M axis across
            # the 2 TensorCores; if not, switch to pltpu.CORE_PARALLEL with an
            # even grid step count.
            dimension_semantics=("parallel",),
            vmem_limit_bytes=vmem_limit),
        cost_estimate=cost,
    )(xc, w1c, b1r, w2c, b2r)

    return out if M_pad == M else out[:M]


# ---------------------------------------------------------------------------
# Module-level forward
# ---------------------------------------------------------------------------
def prepare_params(params, compute_dtype=jnp.bfloat16):
    """Cast the Mlp weights to the matmul compute dtype ONCE, outside the hot
    per-step path, so each kernel call reads only the small weight copy from
    HBM instead of re-casting ~(C*H + H*H) f32 bytes every call."""
    p = dict(params)
    p["fc1_w"] = params["fc1_w"].astype(compute_dtype)
    p["fc2_w"] = params["fc2_w"].astype(compute_dtype)
    return p


def caption_embedder_forward(caption, params, *, uncond_prob, train,
                             force_drop_ids=None, rng=None,
                             compute_dtype=jnp.float32, out_dtype=None):
    """caption: (B, 1, T, C).  Returns (B, 1, T, H) in out_dtype (default f32).

    compute_dtype: dtype fed to the two MXU matmuls.  bfloat16 is recommended
    on ALL generations (v5e/v6e/v7x MXUs are bf16-native; f32 runs multi-pass)
    -- accumulation, bias add and the tanh-GELU always stay float32 in-kernel.
    Pre-cast weights with prepare_params() to avoid a per-call cast pass.
    """
    if out_dtype is None:
        out_dtype = jnp.float32

    B, one, T, C = caption.shape
    assert one == 1
    y_embedding = params["y_embedding"]          # (T, C)
    w1, b1 = params["fc1_w"], params["fc1_b"]    # (C, H), (H,)
    w2, b2 = params["fc2_w"], params["fc2_b"]    # (H, H), (H,)
    H = w1.shape[1]

    if train:
        assert caption.shape[2:] == y_embedding.shape

    x = caption.reshape(B, T, C)

    use_dropout = uncond_prob > 0
    if (train and use_dropout) or (force_drop_ids is not None):
        # token_drop: per-batch replace caption with the learned null embedding.
        # TODO(synk): for very large M (=B*T in the thousands), fuse this
        # where+cast into the kernel via PrefetchScalarGridSpec (per-batch drop
        # mask in SMEM, y_embedding resident in VMEM) to halve x HBM traffic.
        if force_drop_ids is None:
            drop_ids = jax.random.uniform(rng, (B,)) < uncond_prob
        else:
            drop_ids = force_drop_ids == 1
        x = jnp.where(drop_ids[:, None, None],
                      y_embedding[None].astype(x.dtype), x)
    # else: eval / no-drop path skips the blend and the y_embedding read.

    out = _mlp_pallas(x.reshape(B * T, C), w1, b1, w2, b2,
                      compute_dtype=compute_dtype, out_dtype=out_dtype)
    return out.reshape(B, 1, T, H)


def init_params(key, in_channels, hidden_size, token_num):
    k_emb, k_w1, k_b1, k_w2, k_b2 = jax.random.split(key, 5)
    # register_buffer('y_embedding', randn(token_num, in_channels)/sqrt(in_channels))
    y_embedding = (jax.random.normal(k_emb, (token_num, in_channels), jnp.float32)
                   / math.sqrt(in_channels))
    # nn.Linear default init: U(-1/sqrt(fan_in), 1/sqrt(fan_in))
    lim1 = 1.0 / math.sqrt(in_channels)
    lim2 = 1.0 / math.sqrt(hidden_size)
    fc1_w = jax.random.uniform(k_w1, (in_channels, hidden_size), jnp.float32, -lim1, lim1)
    fc1_b = jax.random.uniform(k_b1, (hidden_size,), jnp.float32, -lim1, lim1)
    fc2_w = jax.random.uniform(k_w2, (hidden_size, hidden_size), jnp.float32, -lim2, lim2)
    fc2_b = jax.random.uniform(k_b2, (hidden_size,), jnp.float32, -lim2, lim2)
    return dict(y_embedding=y_embedding, fc1_w=fc1_w, fc1_b=fc1_b,
                fc2_w=fc2_w, fc2_b=fc2_b)


def _reference(caption, params, drop_ids):
    B, _, T, C = caption.shape
    drop = drop_ids.astype(jnp.float32).reshape(B, 1, 1, 1)
    x = drop * params["y_embedding"][None, None] + (1.0 - drop) * caption
    h = x @ params["fc1_w"] + params["fc1_b"]
    c = 0.7978845608028654
    h = 0.5 * h * (1.0 + jnp.tanh(c * (h + 0.044715 * h ** 3)))
    return h @ params["fc2_w"] + params["fc2_b"]


if __name__ == "__main__":
    B, T, C, H = 2, 8, 16, 32           # batch, token_num, in_channels, hidden_size
    uncond_prob = 0.1

    key = jax.random.PRNGKey(0)
    k_params, k_caption = jax.random.split(key)
    params = init_params(k_params, in_channels=C, hidden_size=H, token_num=T)

    caption = jax.random.normal(k_caption, (B, 1, T, C), jnp.float32)
    # deterministic token_drop: drop batch 0, keep batch 1
    force_drop_ids = jnp.array([1, 0], dtype=jnp.int32)
    ref = _reference(caption, params, force_drop_ids == 1)

    # --- f32 compute path (exact) ---
    out = caption_embedder_forward(caption, params, uncond_prob=uncond_prob,
                                   train=True, force_drop_ids=force_drop_ids)
    out = jax.block_until_ready(out)
    assert out.shape == (B, 1, T, H)
    assert jnp.allclose(out, ref, atol=1e-5, rtol=1e-5)

    # --- eval / no-drop path (blend skipped entirely) ---
    out_eval = caption_embedder_forward(caption, params, uncond_prob=uncond_prob,
                                        train=False)
    out_eval = jax.block_until_ready(out_eval)
    ref_eval = _reference(caption, params, jnp.zeros((B,), dtype=bool))
    assert jnp.allclose(out_eval, ref_eval, atol=1e-5, rtol=1e-5)

    # --- bf16 matmul path: pre-cast weights once, bf16 output, f32 accumulate ---
    params_bf16 = prepare_params(params, jnp.bfloat16)
    out_bf16 = caption_embedder_forward(caption, params_bf16,
                                        uncond_prob=uncond_prob, train=True,
                                        force_drop_ids=force_drop_ids,
                                        compute_dtype=jnp.bfloat16,
                                        out_dtype=jnp.bfloat16)
    out_bf16 = jax.block_until_ready(out_bf16)
    assert out_bf16.dtype == jnp.bfloat16
    assert jnp.allclose(out_bf16.astype(jnp.float32), ref, atol=5e-2, rtol=5e-2)

    print("KERNEL_OK")
</pallas_src>

<mosaic_0001>
module attributes {stable_mosaic.version = 11 : i64} {
  func.func @_probe(%arg0: i32, %arg1: memref<8x128xf32, #tpu.memory_space<vmem>>, %arg2: memref<8x128xf32, #tpu.memory_space<vmem>>) attributes {dimension_semantics = [#tpu.dimension_semantics<arbitrary>], iteration_bounds = array<i64: 2>, scalar_prefetch = 0 : i64, scratch_operands = 0 : i64, tpu.core_type = #tpu.core_type<tc>, window_params = [{pipeline_mode = #tpu.pipeline_mode<synchronous>, transform_indices = @transform_0, window_bounds = array<i64: 8, 128>}, {transform_indices = @transform_1, window_bounds = array<i64: 8, 128>}]} {
    %c0 = arith.constant 0 : index
    %c0_0 = arith.constant 0 : index
    %0 = vector.load %arg1[%c0, %c0_0] : memref<8x128xf32, #tpu.memory_space<vmem>>, vector<8x128xf32>
    %cst = arith.constant 2.000000e+00 : f32
    %1 = vector.broadcast %cst : f32 to vector<8x128xf32>
    %2 = arith.mulf %0, %1 : vector<8x128xf32>
    %c0_1 = arith.constant 0 : index
    %c0_2 = arith.constant 0 : index
    %3 = vector.load %arg2[%c0_1, %c0_2] : memref<8x128xf32, #tpu.memory_space<vmem>>, vector<8x128xf32>
    tpu.vector_store %arg2[%c0_1, %c0_2], %2 {strides = array<i32>} : memref<8x128xf32, #tpu.memory_space<vmem>>, vector<8x128xf32>,
    return
  }
  func.func @transform_0(%arg0: i32) -> (i32, i32) {
    %c0_i32 = arith.constant 0 : i32
    %c0_i32_0 = arith.constant 0 : i32
    %c0_i32_1 = arith.constant 0 : i32
    return %c0_i32, %c0_i32_0 : i32, i32
  }
  func.func @transform_1(%arg0: i32) -> (i32, i32) {
    %c0_i32 = arith.constant 0 : i32
    %c0_i32_0 = arith.constant 0 : i32
    return %arg0, %c0_i32 : i32, i32
  }
}

module attributes {stable_mosaic.version = 11 : i64} {
  func.func @_mlp_kernel(%arg0: i32, %arg1: memref<16x16xf32, #tpu.memory_space<vmem>>, %arg2: memref<16x32xf32, #tpu.memory_space<vmem>>, %arg3: memref<1x32xf32, #tpu.memory_space<vmem>>, %arg4: memref<32x32xf32, #tpu.memory_space<vmem>>, %arg5: memref<1x32xf32, #tpu.memory_space<vmem>>, %arg6: memref<16x32xf32, #tpu.memory_space<vmem>>) attributes {dimension_semantics = [#tpu.dimension_semantics<parallel>], iteration_bounds = array<i64: 1>, scalar_prefetch = 0 : i64, scratch_operands = 0 : i64, tpu.core_type = #tpu.core_type<tc>, window_params = [{transform_indices = @transform_0, window_bounds = array<i64: 16, 16>}, {pipeline_mode = #tpu.pipeline_mode<synchronous>, transform_indices = @transform_1, window_bounds = array<i64: 16, 32>}, {pipeline_mode = #tpu.pipeline_mode<synchronous>, transform_indices = @transform_2, window_bounds = array<i64: 1, 32>}, {pipeline_mode = #tpu.pipeline_mode<synchronous>, transform_indices = @transform_3, window_bounds = array<i64: 32, 32>}, {pipeline_mode = #tpu.pipeline_mode<synchronous>, transform_indices = @transform_4, window_bounds = array<i64: 1, 32>}, {transform_indices = @transform_5, window_bounds = array<i64: 16, 32>}]} {
    %c0 = arith.constant 0 : index
    %c0_0 = arith.constant 0 : index
    %0 = vector.load %arg1[%c0, %c0_0] : memref<16x16xf32, #tpu.memory_space<vmem>>, vector<16x16xf32>
    %c0_1 = arith.constant 0 : index
    %c0_2 = arith.constant 0 : index
    %1 = vector.load %arg2[%c0_1, %c0_2] : memref<16x32xf32, #tpu.memory_space<vmem>>, vector<16x32xf32>
    %cst = arith.constant dense<0.000000e+00> : vector<16x32xf32>
    %2 = tpu.matmul %0, %1, %cst {dimension_numbers = #tpu.dot_dimension_numbers<[1], [0], [0], [1], [0, 0, 1, 1], [], []>} : vector<16x16xf32>, vector<16x32xf32>, vector<16x32xf32> -> vector<16x32xf32>
    %c0_3 = arith.constant 0 : index
    %c0_4 = arith.constant 0 : index
    %3 = vector.load %arg3[%c0_3, %c0_4] : memref<1x32xf32, #tpu.memory_space<vmem>>, vector<1x32xf32>
    %4 = vector.broadcast %3 : vector<1x32xf32> to vector<16x32xf32>
    %5 = arith.addf %2, %4 : vector<16x32xf32>
    %cst_5 = arith.constant 5.000000e-01 : f32
    %6 = vector.broadcast %cst_5 : f32 to vector<16x32xf32>
    %7 = arith.mulf %6, %5 : vector<16x32xf32>
    %8 = arith.mulf %5, %5 : vector<16x32xf32>
    %9 = arith.mulf %8, %5 : vector<16x32xf32>
    %cst_6 = arith.constant 4.471500e-02 : f32
    %10 = vector.broadcast %cst_6 : f32 to vector<16x32xf32>
    %11 = arith.mulf %10, %9 : vector<16x32xf32>
    %12 = arith.addf %5, %11 : vector<16x32xf32>
    %cst_7 = arith.constant 0.797884583 : f32
    %13 = vector.broadcast %cst_7 : f32 to vector<16x32xf32>
    %14 = arith.mulf %13, %12 : vector<16x32xf32>
    %15 = math.tanh %14 : vector<16x32xf32>
    %cst_8 = arith.constant 1.000000e+00 : f32
    %16 = vector.broadcast %cst_8 : f32 to vector<16x32xf32>
    %17 = arith.addf %16, %15 : vector<16x32xf32>
    %18 = arith.mulf %7, %17 : vector<16x32xf32>
    %c0_9 = arith.constant 0 : index
    %c0_10 = arith.constant 0 : index
    %19 = vector.load %arg4[%c0_9, %c0_10] : memref<32x32xf32, #tpu.memory_space<vmem>>, vector<32x32xf32>
    %cst_11 = arith.constant dense<0.000000e+00> : vector<16x32xf32>
    %20 = tpu.matmul %18, %19, %cst_11 {dimension_numbers = #tpu.dot_dimension_numbers<[1], [0], [0], [1], [0, 0, 1, 1], [], []>} : vector<16x32xf32>, vector<32x32xf32>, vector<16x32xf32> -> vector<16x32xf32>
    %c0_12 = arith.constant 0 : index
    %c0_13 = arith.constant 0 : index
    %21 = vector.load %arg5[%c0_12, %c0_13] : memref<1x32xf32, #tpu.memory_space<vmem>>, vector<1x32xf32>
    %22 = vector.broadcast %21 : vector<1x32xf32> to vector<16x32xf32>
    %23 = arith.addf %20, %22 : vector<16x32xf32>
    %c0_14 = arith.constant 0 : index
    %c0_15 = arith.constant 0 : index
    %24 = vector.load %arg6[%c0_14, %c0_15] : memref<16x32xf32, #tpu.memory_space<vmem>>, vector<16x32xf32>
    tpu.vector_store %arg6[%c0_14, %c0_15], %23 {strides = array<i32>} : memref<16x32xf32, #tpu.memory_space<vmem>>, vector<16x32xf32>,
    return
  }
  func.func @transform_0(%arg0: i32) -> (i32, i32) {
    %c0_i32 = arith.constant 0 : i32
    %c0_i32_0 = arith.constant 0 : i32
    return %arg0, %c0_i32 : i32, i32
  }
  func.func @transform_1(%arg0: i32) -> (i32, i32) {
    %c0_i32 = arith.constant 0 : i32
    %c0_i32_0 = arith.constant 0 : i32
    %c0_i32_1 = arith.constant 0 : i32
    return %c0_i32, %c0_i32_0 : i32, i32
  }
  func.func @transform_2(%arg0: i32) -> (i32, i32) {
    %c0_i32 = arith.constant 0 : i32
    %c0_i32_0 = arith.constant 0 : i32
    %c0_i32_1 = arith.constant 0 : i32
    return %c0_i32, %c0_i32_0 : i32, i32
  }
  func.func @transform_3(%arg0: i32) -> (i32, i32) {
    %c0_i32 = arith.constant 0 : i32
    %c0_i32_0 = arith.constant 0 : i32
    %c0_i32_1 = arith.constant 0 : i32
    return %c0_i32, %c0_i32_0 : i32, i32
  }
  func.func @transform_4(%arg0: i32) -> (i32, i32) {
    %c0_i32 = arith.constant 0 : i32
    %c0_i32_0 = arith.constant 0 : i32
    %c0_i32_1 = arith.constant 0 : i32
    return %c0_i32, %c0_i32_0 : i32, i32
  }
  func.func @transform_5(%arg0: i32) -> (i32, i32) {
    %c0_i32 = arith.constant 0 : i32
    %c0_i32_0 = arith.constant 0 : i32
    return %arg0, %c0_i32 : i32, i32
  }
}

</mosaic_0001>

<bundles_post_ra>
// kernel: tpu_custom_call.1
= control target key start
LH: loop header
LB: loop body
LE: loop exit
PB: predicated region body
PF: predicated region fallthrough
CT: control target
= control target key end

     0   :  { %6 = vsyncpa [#allocation3], 0  ;;  %s482_s0 = inlined_call_operand.hbm [shape: f32[8,128], index: 0, kind: input, shape index: {}]   ;;  %s483_s1 = inlined_call_operand.hbm [shape: f32[16,128], index: 1, kind: output, shape index: {}]  }
   0x1   :  { %7 = vsyncpa [#allocation4], 0 }
   0x2   :  { %9 = vsyncpa [#allocation4 + $0x1], 0  ;;  %s352_s6 = smov 0   ;;  %s354_s7 = smov 0  }
   0x3   :  { %s356_s8 = smov 0   ;;  %s358_s9 = smov 0  }
   0x4 LB: > { %s373_s10 = sadd.s32 4294967295, %s338_s9   ;;  %s184_s11 = sadd.s32 4294967294, %s338_s9   ;;  %s338_s9 = sphi %s358_s9, %s499_s9   ;;  %s334_s8 = sphi %s356_s8, %s498_s8   ;;  %s330_s7 = sphi %s354_s7, %s497_s7   ;;  %s326_s6 = sphi %s352_s6, %s496_s6  }
   0x5   : > { %s377_s12 = sadd.s32 1, %s338_s9   ;;  %s43_s13 = sadd.s32 1, %s334_s8 }
   0x6   : > { %s40_s14 = ssub.s32 %s338_s9, %s377_s12  ;;  %p53_p0 = scmp.ne.s32.totalorder %s334_s8, %s330_s7 }
   0x7   : > { %p41_p1 = scmp.eq.s32.totalorder %s40_s14, 0  ;;  %p54_p2 = scmp.eq.s32.totalorder %s373_s10, 1 }
   0x8   : > { %p59_p3 = scmp.ne.s32.totalorder %s330_s7, %s326_s6  ;;  %p60_p4 = scmp.eq.s32.totalorder %s184_s11, 1 }
   0x9   : > { %s388_s15 = scalar_select %p41_p1, %s334_s8, %s43_s13  }
   0xa   : > { %p390_p5 = por %p54_p2, %p53_p0  ;;  %p394_p6 = por %p60_p4, %p59_p3 }
   0xb   : > { %p185_p7 = scmp.ge.s32.totalorder %s338_s9, 1  ;;  %p67_p8 = scmp.lt.s32.totalorder %s338_s9, 3 }
   0xc   : > { %s487_s16 = scalar_select %p390_p5, 1, 0 }
   0xd   : > { %s488_s17 = scalar_select %p394_p6, 1, 0 }
   0xe   : > { %p484_p9 = scmp.eq.s32.totalorder %s373_s10, 0  ;;  %p401_p10 = pnand %p185_p7, %p67_p8 }
   0xf   : > { %s340_s19 = smov [#allocation2]   ;;  %s244_s24 = scalar_lea.hbm %s482_s0, 128 }
  0x10   : > { %s489_s18 = scalar_select %p401_p10, 1, 0 }
  0x11   : > { %s80_s20 = sshll.u32 %s340_s19, 4  ;;  %p200_p11 = pneg %p401_p10  ;;  %s81_s20 = int_to_ptr.vmem [resolvable:$true] %s80_s20 }
  0x12   : > { %p245_p13 = scmp.ne.s32.totalorder %s482_s0, %s244_s24  ;;  %p251_p3 = scmp.lt.u32.totalorder %s244_s24, %s482_s0 }
  0x13   : > { %p409_p12 = pnand %p484_p9, %p200_p11 }
  0x15   : > { %p246_p0 = pneg %p409_p12 }
  0x17   : > { %p247_p1 = pnand %p246_p0, %p245_p13 }
  0x19   : > { %p248_p2 = pneg %p247_p1 }
  0x1b   : > { %p253_p4 = pnand %p251_p3, %p248_p2 }
  0x1d   : > { %256 = shalt.err (!%p253_p4)
}
  0x1e   : > { %s257_s29 = scalar_lea.vmem %s81_s20, 128  ;;  %p265_p9 = scmp.lt.s32.totalorder %s81_s20, %s81_s20 }
  0x1f   : > { %p258_p7 = scmp.ne.s32.totalorder %s81_s20, %s257_s29  ;;  %p266_p6 = scmp.lt.s32.totalorder %s257_s29, %s257_s29 }
  0x21   : > { %p260_p8 = pnand %p258_p7, %p246_p0  ;;  %p267_p5 = por %p266_p6, %p265_p9 }
  0x23   : > { %p261_p11 = pneg %p260_p8 }
  0x25   : > { %p268_p10 = pnand %p267_p5, %p261_p11 }
  0x27   : > { %271 = shalt.err (!%p268_p10)
}
  0x28   : > { %203 = dma.hbm_to_vmem [thread:$0]  (!%p409_p12), %s482_s0, 128, %s81_s20, [#allocation3]  }
  0x29   : > { %p491_p13 = scmp.ne.s32.totalorder %s489_s18, 0 }
  0x2a   : > { %p492_p1 = scmp.eq.s32.totalorder (!%p491_p13), %s373_s10, 0 }
  0x2b   : > { %93 = sbr.rel (%p491_p13) target bundleno = 77 (0x4d), region = 24 }
  0x32   : > { %317 = dma.done.wait (%p492_p1), [#allocation3], 128   ;;  %p493_p0 = pmov %p492_p1 }
  0x33   : > { %s105_s3 = sand.u32 1, %s330_s7   ;;  %s191_s13 = sshll.u32 %s373_s10, 7  ;;  %v108_v0 = vld [vmem:[#allocation2] sm:$0xff] }
  0x34   : > { %319 = vsyncadd (%p493_p0), [#allocation3], 4294967168  ;;  %s189_s4 = sshll.u32 %s105_s3, 3  ;;  %v109_v1 = vmul.f32 2.0, %v108_v0  ;;  %s442_s19 = scalar_lea.hbm %s483_s1, %s191_s13 }
  0x35   : > { %s107_s5 = scalar_lea.vmem [#allocation5], %s189_s4  ;;  %s112_s20 = scalar_lea.sflag [#allocation4], %s105_s3 }
  0x36   : > { %s125_s11 = sshll.u32 %s107_s5, 4  ;;  %110 = vst [vmem:[%s107_s5] sm:$0xff] %v109_v1  ;;  %p494_p6 = scmp.ne.s32.totalorder %s487_s16, 0  ;;  %s437_s11 = int_to_ptr.vmem [resolvable:$true] %s125_s11 }
  0x37   : > { %s272_s21 = scalar_lea.vmem %s437_s11, 128  ;;  %s341_s10 = smov [#allocation5]  }
  0x38   : > { %p273_p5 = scmp.ne.s32.totalorder %s437_s11, %s272_s21  ;;  %s276_s22 = sshll.u32 %s341_s10, 4  ;;  %s277_s22 = int_to_ptr.vmem [resolvable:$false] %s276_s22 }
  0x39   : > { %s278_s23 = scalar_lea.vmem %s277_s22, 256  ;;  %p279_p12 = scmp.lt.s32.totalorder %s437_s11, %s277_s22 }
  0x3a   : > { %p274_p9 = pnand %p273_p5, %p494_p6  ;;  %p280_p2 = scmp.lt.s32.totalorder %s278_s23, %s272_s21 }
  0x3c   : > { %p275_p10 = pneg %p274_p9  ;;  %p281_p3 = por %p280_p2, %p279_p12 }
  0x3e   : > { %p282_p4 = pnand %p281_p3, %p275_p10 }
  0x40   : > { %285 = shalt.err (!%p282_p4)
}
  0x41   : > { %s286_s24 = scalar_lea.hbm %s442_s19, 128  ;;  %s290_s27 = scalar_lea.hbm %s483_s1, 256 }
  0x42   : > { %p287_p7 = scmp.ne.s32.totalorder %s442_s19, %s286_s24  ;;  %p291_p13 = scmp.lt.u32.totalorder %s442_s19, %s483_s1 }
  0x43   : > { %p292_p1 = scmp.lt.u32.totalorder %s290_s27, %s286_s24  ;;  %p294_p5 = scmp.lt.u32.totalorder %s286_s24, %s442_s19 }
  0x44   : > { %p288_p8 = pnand %p287_p7, %p494_p6 }
  0x45   : > { %p293_p0 = por %p292_p1, %p291_p13 }
  0x46   : > { %p289_p11 = pneg %p288_p8 }
  0x47   : > { %p295_p9 = por %p294_p5, %p293_p0 }
  0x49   : > { %p296_p10 = pnand %p295_p9, %p289_p11 }
  0x4b   : > { %299 = shalt.err (!%p296_p10)
}
  0x4c   : > { %198 = dma.vmem_to_hbm [thread:$0]  (%p494_p6), %s437_s11, 128, %s442_s19, %s112_s20  }
  0x4d PF: > { %p210_p12 = scmp.ge.s32.totalorder %s338_s9, 2  ;;  %s137_s30 = sand.u32 1, %s326_s6  }
  0x4e   : > { %p495_p2 = scmp.ne.s32.totalorder %s488_s17, 0  ;;  %s138_s2 = scalar_lea.sflag [#allocation4], %s137_s30 }
  0x50   : > { %p205_p3 = pnand %p210_p12, %p495_p2 }
  0x52   : > { %321 = dma.done.wait (!%p205_p3), %s138_s2, 128  }
  0x53   : > { %323 = vsyncadd (!%p205_p3), %s138_s2, 4294967168  ;;  %p12_p4 = scmp.ge.s32.totalorder %s377_s12, 4   ;;  %s496_s6 = smov %s330_s7 }
  0x54   : > { %s497_s7 = smov %s334_s8  ;;  %s498_s8 = smov %s388_s15 }
  0x55   : > { %s499_s9 = smov %s377_s12  ;;  %14 = sbr.rel (!%p12_p4) target bundleno = 4 (0x4), region = 61 }
  0x5c   :  { %143 = vsyncpa [#allocation3], 1 }
  0x5d   :  { %145 = vsyncpa [#allocation3 + $0x1], 1 }
  0x5e   :  { %146 = vsyncpa [#allocation4], 1 }
  0x5f   :  { %148 = vsyncpa [#allocation4 + $0x1], 1 }

// kernel: tpu_custom_call.1
= control target key start
LH: loop header
LB: loop body
LE: loop exit
PB: predicated region body
PF: predicated region fallthrough
CT: control target
= control target key end

     0   :  { %10 = vsyncpa [#allocation3], 0  ;;  %s545_s0 = inlined_call_operand.hbm [shape: f32[16,16], index: 0, kind: input, shape index: {}]   ;;  %s546_s1 = inlined_call_operand.hbm [shape: f32[16,32], index: 1, kind: input, shape index: {}]   ;;  %s547_s2 = inlined_call_operand.vmem [shape: f32[1,32], index: 2, kind: input, shape index: {}]   ;;  %s548_s3 = inlined_call_operand.hbm [shape: f32[32,32], index: 3, kind: input, shape index: {}]   ;;  %s549_s4 = inlined_call_operand.vmem [shape: f32[1,32], index: 4, kind: input, shape index: {}]   ;;  %s550_s5 = inlined_call_operand.hbm [shape: f32[16,32], index: 5, kind: output, shape index: {}]  }
   0x1   :  { %11 = vsyncpa [#allocation6], 0 }
   0x2   :  { %12 = vsyncpa [#allocation4], 0  ;;  %s436_s18 = smov [#allocation5]   ;;  %s437_s20 = smov [#allocation2]  }
   0x3   :  { %s30_s19 = sshll.u32 %s436_s18, 4  ;;  %s18_s21 = sshll.u32 %s437_s20, 4  ;;  %s31_s19 = int_to_ptr.vmem [resolvable:$true] %s30_s19  ;;  %s472_s21 = int_to_ptr.vmem [resolvable:$true] %s18_s21 }
   0x4   :  { %s342_s24 = scalar_lea.hbm %s546_s1, 256 }
   0x5   :  { %p343_p0 = scmp.ne.s32.totalorder %s546_s1, %s342_s24  ;;  %p346_p1 = scmp.lt.u32.totalorder %s342_s24, %s546_s1 }
   0x7   :  { %p348_p2 = pnand %p346_p1, %p343_p0 }
   0x9   :  { %351 = shalt.err (!%p348_p2)
}
   0xa   :  { %s352_s29 = scalar_lea.vmem %s31_s19, 256  ;;  %p357_p4 = scmp.lt.s32.totalorder %s31_s19, %s31_s19 }
   0xb   :  { %p353_p3 = scmp.ne.s32.totalorder %s31_s19, %s352_s29  ;;  %p358_p5 = scmp.lt.s32.totalorder %s352_s29, %s352_s29 }
   0xd   :  { %p359_p6 = por %p358_p5, %p357_p4 }
   0xf   :  { %p360_p7 = pnand %p359_p6, %p353_p3 }
  0x11   :  { %363 = shalt.err (!%p360_p7)
}
  0x12   :  { %s438_s30 = smov 128   ;;  %s439_s6 = smov 8  }
  0x13   :  { %36 = dma.hbm_to_vmem [thread:$0]  %s546_s1, 256, %s31_s19, [#allocation6], %s438_s30, %s438_s30, %s439_s6  }
  0x14   :  { %s364_s11 = scalar_lea.hbm %s545_s0, 256 }
  0x15   :  { %p365_p8 = scmp.ne.s32.totalorder %s545_s0, %s364_s11  ;;  %p368_p9 = scmp.lt.u32.totalorder %s364_s11, %s545_s0 }
  0x17   :  { %p370_p10 = pnand %p368_p9, %p365_p8 }
  0x19   :  { %373 = shalt.err (!%p370_p10)
}
  0x1a   :  { %s374_s16 = scalar_lea.vmem %s472_s21, 256  ;;  %p379_p12 = scmp.lt.s32.totalorder %s472_s21, %s472_s21 }
  0x1b   :  { %p375_p11 = scmp.ne.s32.totalorder %s472_s21, %s374_s16  ;;  %p380_p13 = scmp.lt.s32.totalorder %s374_s16, %s374_s16 }
  0x1d   :  { %p381_p0 = por %p380_p13, %p379_p12 }
  0x1f   :  { %p382_p1 = pnand %p381_p0, %p375_p11 }
  0x21   :  { %385 = shalt.err (!%p382_p1)
}
  0x22   :  { %24 = dma.hbm_to_vmem [thread:$0]  %s545_s0, 256, %s472_s21, [#allocation3], %s438_s30, %s438_s30, %s439_s6  }
  0x23   :  { %s440_s18 = smov [#allocation7]   ;;  %s386_s23 = scalar_lea.hbm %s548_s3, 512 }
  0x24   :  { %s44_s19 = sshll.u32 %s440_s18, 4  ;;  %p387_p2 = scmp.ne.s32.totalorder %s548_s3, %s386_s23  ;;  %s45_s19 = int_to_ptr.vmem [resolvable:$true] %s44_s19 }
  0x25   :  { %p390_p3 = scmp.lt.u32.totalorder %s386_s23, %s548_s3 }
  0x27   :  { %p392_p4 = pnand %p390_p3, %p387_p2 }
  0x29   :  { %395 = shalt.err (!%p392_p4)
}
  0x2a   :  { %s396_s28 = scalar_lea.vmem %s45_s19, 512  ;;  %p401_p6 = scmp.lt.s32.totalorder %s45_s19, %s45_s19 }
  0x2b   :  { %p397_p5 = scmp.ne.s32.totalorder %s45_s19, %s396_s28  ;;  %p402_p7 = scmp.lt.s32.totalorder %s396_s28, %s396_s28 }
  0x2d   :  { %p403_p8 = por %p402_p7, %p401_p6 }
  0x2f   :  { %p404_p9 = pnand %p403_p8, %p397_p5 }
  0x31   :  { %407 = shalt.err (!%p404_p9)
}
  0x32   :  { %50 = dma.hbm_to_vmem [thread:$0]  %s548_s3, 512, %s45_s19, [#allocation6], %s438_s30, %s438_s30, %s439_s6  }
  0x33   :  { %430 = dma.done.wait [#allocation3], 256  }
  0x34   :  { %431 = vsyncadd [#allocation3], 4294967040 }
  0x35   :  { %432 = dma.done.wait [#allocation6], 768  }
  0x36   :  { %433 = vsyncadd [#allocation6], 4294966528  ;;  %vm73_vm0 = vcmask 130048   ;;  %v64_v0 = vld [vmem:[#allocation5] sm:$0xff]  ;;  %v65_v1 = vld [vmem:[#allocation5 + $0x8] sm:$0xff]  ;;  %vm184_vm1 = vcmask 261120  }
  0x37   :  { %v62_v2 = vld [vmem:[#allocation2] sm:$0xff]  ;;  %v320_v3 = vpack.c.bf16 %v65_v1, %v64_v0  ;;  %v63_v4 = vld [vmem:[#allocation2 + $0x8] sm:$0xff]  ;;  %v175_v7 = vld [vmem:[#allocation7 + $0x10] sm:$0xff]  ;;  %s441_s8 = smov [#allocation8]  }
  0x38   :  { %306 = vmatprep.mubr.msk.f32.mxu0 %vm73_vm0, %v62_v2  ;;  %v173_v5 = vld [vmem:[#allocation7] sm:$0xff]  ;;  %v174_v6 = vld [vmem:[#allocation7 + $0x8] sm:$0xff]  ;;  %v176_v9 = vld [vmem:[#allocation7 + $0x18] sm:$0xff]  ;;  %s273_s9 = sshll.u32 %s441_s8, 4  ;;  %s274_s9 = int_to_ptr.vmem [resolvable:$true] %s273_s9 }
  0x39   :  { %321 = vmatprep.subr.bf16.mxu0 %v320_v3  ;;  %v324_v8 = vpack.c.bf16 %v174_v6, %v173_v5  ;;  %v328_v10 = vpack.c.bf16 %v176_v9, %v175_v7  ;;  %v286_v11 = vld [vmem:[%s547_s2] ss:$0 sm:$0xff]  ;;  %s408_s10 = scalar_lea.vmem %s274_s9, 256  ;;  %p413_p11 = scmp.lt.s32.totalorder %s274_s9, %s274_s9 }
  0x3a   :  { %323 = vmatpush3.bf16.msra.mxu0 %v320_v3  ;;  %v289_v34 = vld [vmem:[%s549_s4] ss:$0 sm:$0xff]  ;;  %p409_p10 = scmp.ne.s32.totalorder %s274_s9, %s408_s10  ;;  %p414_p12 = scmp.lt.s32.totalorder %s408_s10, %s408_s10 }
  0x3b   :  { %325 = vmatprep.subr.bf16.mxu1 %v324_v8 }
  0x3c   :  { %327 = vmatpush3.bf16.msra.mxu1 %v324_v8  ;;  %p415_p13 = por %p414_p12, %p413_p11 }
  0x3d   :  { %307 = vmatmul.mubr.msk.f32.vlgmr.msra.gmra.mrb[0].mxu0 %vm73_vm0, %v63_v4  ;;  %329 = vmatprep.subr.bf16.mxu1 %v328_v10 }
  0x3e   :  { %p416_p0 = pnand %p415_p13, %p409_p10 }
  0x40   :  { %331 = vmatpush3.bf16.msra.mxu1 %v328_v10 }
 0x110   :  { %v308_v12 = vpop.f32.mrb[0].mxu0 }
 0x111   :  { %v152_v13 = vadd.f32 %v308_v12, %v286_v11  ;;  %v146_v14 = vpop.f32.mrb[1].mxu0 }
 0x112   :  { %v147_v15 = vadd.f32 %v286_v11, %v146_v14 }
 0x113   :  { %v158_v16 = vmul.f32 %v152_v13, %v152_v13  ;;  %v156_v31 = vmul.f32 0.5, %v152_v13 }
 0x114   :  { %v157_v17 = vmul.f32 %v147_v15, %v147_v15  ;;  %v155_v29 = vmul.f32 0.5, %v147_v15 }
 0x115   :  { %v160_v18 = vmul.f32 %v158_v16, %v152_v13 }
 0x116   :  { %v159_v19 = vmul.f32 %v157_v17, %v147_v15 }
 0x117   :  { %v162_v20 = vmul.f32 0.044715, %v160_v18 }
 0x118   :  { %v161_v21 = vmul.f32 0.044715, %v159_v19 }
 0x119   :  { %v164_v22 = vadd.f32 %v162_v20, %v152_v13 }
 0x11a   :  { %v163_v23 = vadd.f32 %v161_v21, %v147_v15 }
 0x11b   :  { %v166_v24 = vmul.f32 0.7978846, %v164_v22 }
 0x11c   :  { %v165_v25 = vmul.f32 0.7978846, %v163_v23 }
 0x11d   :  { %338 = vtanh.f32 %v166_v24 }
 0x11e   :  { %340 = vtanh.f32 %v165_v25 }
 0x127   :  { %v339_v26 = vpop.eup %338 }
 0x128   :  { %v341_v27 = vpop.eup %340  ;;  %v170_v28 = vadd.f32 1.0, %v339_v26 }
 0x129   :  { %v169_v30 = vadd.f32 1.0, %v341_v27 }
 0x12a   :  { %v172_v33 = vmul.f32 %v170_v28, %v156_v31 }
 0x12b   :  { %v171_v32 = vmul.f32 %v169_v30, %v155_v29 }
 0x12d   :  { %317 = vmatprep.mubr.msk.f32.mxu1 %vm184_vm1, %v171_v32 }
 0x12e   :  { %318 = vmatmul.mubr.msk.f32.vlgmr.msra.gmra.mrb[0].mxu1 %vm184_vm1, %v172_v33 }
 0x201   :  { %v319_v35 = vpop.f32.mrb[0].mxu1 }
 0x202   :  { %v263_v36 = vadd.f32 %v319_v35, %v289_v34  ;;  %v257_v37 = vpop.f32.mrb[1].mxu1 }
 0x203   :  { %v258_v38 = vadd.f32 %v289_v34, %v257_v37 }
 0x204   :  { %267 = vst.msk [vmem:[#allocation8 + $0x8] sm:$0xff] %vm184_vm1, %v263_v36 }
 0x205   :  { %266 = vst.msk [vmem:[#allocation8] sm:$0xff] %vm184_vm1, %v258_v38 }
 0x206   :  { %419 = shalt.err (!%p416_p0)
}
 0x207   :  { %s420_s4 = scalar_lea.hbm %s550_s5, 256 }
 0x208   :  { %p421_p1 = scmp.ne.s32.totalorder %s550_s5, %s420_s4  ;;  %p424_p2 = scmp.lt.u32.totalorder %s420_s4, %s550_s5 }
 0x20a   :  { %p426_p3 = pnand %p424_p2, %p421_p1 }
 0x20c   :  { %429 = shalt.err (!%p426_p3)
}
 0x20d   :  { %279 = dma.vmem_to_hbm [thread:$0]  %s274_s9, 256, %s550_s5, [#allocation4], %s438_s30, %s438_s30, %s439_s6  }
 0x20e   :  { %434 = dma.done.wait [#allocation4], 256  }
 0x20f   :  { %435 = vsyncadd [#allocation4], 4294967040 }
 0x210   :  { %283 = vsyncpa [#allocation3], 1 }
 0x211   :  { %284 = vsyncpa [#allocation6], 1 }
 0x212   :  { %285 = vsyncpa [#allocation4], 1 }

</bundles_post_ra>
